<compile_context>
chip_gen: v7x
topology: tpu7x:2x2x1
jax: 0.10.0
libtpu: 0.0.40
codegen_flags: <defaults>
</compile_context>

<pallas_src>
import jax
import jax.numpy as jnp
from jax.experimental import pallas as pl
from jax.experimental.pallas import tpu as pltpu


def clsnet1_kernel(x_ref, w1_ref, w2_ref, b2_ref, o_ref):
    # x_ref:  (TB, 2048)   bfloat16 -- pooled features (base_model stand-in output)
    # w1_ref: (2048, 256)  bfloat16 -- fc1.weight^T (bias=False)
    # w2_ref: (256, 128)   bfloat16 -- fc2.weight^T zero-padded to lane width 128
    # b2_ref: (1, 128)     float32  -- fc2.bias zero-padded
    # o_ref:  (TB, 128)    float32
    h = jnp.dot(x_ref[...], w1_ref[...],                      # fc1: bf16 in / f32 acc
                preferred_element_type=jnp.float32)
    h = jnp.maximum(h, 0.0)                                   # ReLU
    # drop1: Dropout(0.5) == identity at inference
    out = jnp.dot(h.astype(jnp.bfloat16), w2_ref[...],        # fc2: bf16 in / f32 acc
                  preferred_element_type=jnp.float32)
    o_ref[...] = (out + b2_ref[...]).astype(o_ref.dtype)      # f32 bias add


def _pick_tb(B, block_b):
    """Batch tile: bounded by block_b, multiple of 8 when B allows, and
    <= ceil(B/2) so there are >= 2 grid steps (v7x megacore) for B > 8."""
    if B <= 8:
        return B
    half = (B + 1) // 2
    half8 = ((half + 7) // 8) * 8
    return min(block_b, half8)


def clsnet1_forward(x, fc1_w, fc2_w, fc2_b, *, block_b=256):
    """x: (B, 2048, H, W) feature map (base_model stand-in) or (B, 2048) features.
    fc1_w: (256, 2048); fc2_w: (2, 256); fc2_b: (2,)."""
    if x.ndim == 4:
        B, C, H, W = x.shape
        # TODO(synk): base_model not reimplemented — GAP over the native NCHW
        # layout (single fused XLA reduce, no transpose / re-materialization).
        feat = jnp.mean(x.astype(jnp.float32).reshape(B, C, H * W), axis=-1)
    else:
        B, C = x.shape
        feat = x.astype(jnp.float32)
    feat = feat.astype(jnp.bfloat16)                          # bf16 payload into the kernel

    hidden = fc1_w.shape[0]           # 256
    n_cls = fc2_w.shape[0]            # 2
    NPAD = 128                        # lane-dense output width

    # Weight prep (bf16 MXU inputs, f32 accumulation in-kernel).
    w1_t = fc1_w.T.astype(jnp.bfloat16)                                        # (2048, 256)
    w2_t = jnp.zeros((hidden, NPAD), jnp.bfloat16).at[:, :n_cls].set(
        fc2_w.T.astype(jnp.bfloat16))                                          # (256, 128)
    b2 = jnp.zeros((1, NPAD), jnp.float32).at[:, :n_cls].set(
        fc2_b.astype(jnp.float32))                                             # (1, 128)

    # Batch tiling: bounded TB, zero-pad B up to a multiple of TB (no TB=B blowup).
    TB = _pick_tb(B, block_b)
    nb = -(-B // TB)
    B_pad = nb * TB
    if B_pad != B:
        feat = jnp.pad(feat, ((0, B_pad - B), (0, 0)))

    grid_spec = pltpu.PrefetchScalarGridSpec(
        num_scalar_prefetch=0,
        grid=(nb,),
        in_specs=[
            pl.BlockSpec((TB, C), lambda i: (i, 0)),          # features: tiled over batch
            pl.BlockSpec((C, hidden), lambda i: (0, 0)),      # w1: resident across steps
            pl.BlockSpec((hidden, NPAD), lambda i: (0, 0)),   # w2: resident
            pl.BlockSpec((1, NPAD), lambda i: (0, 0)),        # b2: resident
        ],
        out_specs=pl.BlockSpec((TB, NPAD), lambda i: (i, 0)),
    )

    out_padded = pl.pallas_call(
        clsnet1_kernel,
        out_shape=jax.ShapeDtypeStruct((B_pad, NPAD), jnp.float32),
        grid_spec=grid_spec,
        compiler_params=pltpu.CompilerParams(
            dimension_semantics=("parallel",),    # batch axis shards across TCs on v7x
        ),
    )(feat, w1_t, w2_t, b2)

    return out_padded[:B, :n_cls]


def _reference(x_nchw, fc1_w, fc2_w, fc2_b):
    B, C, H, W = x_nchw.shape
    feat = jnp.mean(x_nchw.reshape(B, C, H * W), axis=-1)
    h = jnp.maximum(feat @ fc1_w.T, 0.0)
    return h @ fc2_w.T + fc2_b


if __name__ == "__main__":
    key = jax.random.PRNGKey(0)
    k_x, k_w1, k_w2, k_b2, k_x2 = jax.random.split(key, 5)

    C = 2048                                   # fc1 fixes the channel count
    class_num = 2

    fc1_w = jax.random.normal(k_w1, (256, C), dtype=jnp.float32) * 0.02
    fc2_w = jax.random.normal(k_w2, (class_num, 256), dtype=jnp.float32) * 0.05
    fc2_b = jax.random.normal(k_b2, (class_num,), dtype=jnp.float32) * 0.01

    # Case 1: tiny batch (single grid step, TB = B).
    B1, H1, W1 = 2, 4, 4
    x1 = jax.random.normal(k_x, (B1, C, H1, W1), dtype=jnp.float32)
    out1 = jax.block_until_ready(clsnet1_forward(x1, fc1_w, fc2_w, fc2_b))
    ref1 = _reference(x1, fc1_w, fc2_w, fc2_b)
    assert out1.shape == (B1, class_num)
    assert jnp.allclose(out1, ref1, atol=2e-2, rtol=2e-2)

    # Case 2: irregular batch (exercises padding + >= 2 grid steps).
    B2, H2, W2 = 20, 2, 2
    x2 = jax.random.normal(k_x2, (B2, C, H2, W2), dtype=jnp.float32)
    out2 = jax.block_until_ready(clsnet1_forward(x2, fc1_w, fc2_w, fc2_b))
    ref2 = _reference(x2, fc1_w, fc2_w, fc2_b)
    assert out2.shape == (B2, class_num)
    assert jnp.allclose(out2, ref2, atol=2e-2, rtol=2e-2)

    print("KERNEL_OK")
</pallas_src>

<mosaic_0001>
module attributes {stable_mosaic.version = 11 : i64} {
  func.func @clsnet1_kernel(%arg0: i32, %arg1: memref<2x2048xbf16, #tpu.memory_space<vmem>>, %arg2: memref<2048x256xbf16, #tpu.memory_space<vmem>>, %arg3: memref<256x128xbf16, #tpu.memory_space<vmem>>, %arg4: memref<1x128xf32, #tpu.memory_space<vmem>>, %arg5: memref<2x128xf32, #tpu.memory_space<vmem>>) attributes {dimension_semantics = [#tpu.dimension_semantics<parallel>], iteration_bounds = array<i64: 1>, scalar_prefetch = 0 : i64, scratch_operands = 0 : i64, tpu.core_type = #tpu.core_type<tc>, window_params = [{transform_indices = @transform_0, window_bounds = array<i64: 2, 2048>}, {pipeline_mode = #tpu.pipeline_mode<synchronous>, transform_indices = @transform_1, window_bounds = array<i64: 2048, 256>}, {pipeline_mode = #tpu.pipeline_mode<synchronous>, transform_indices = @transform_2, window_bounds = array<i64: 256, 128>}, {pipeline_mode = #tpu.pipeline_mode<synchronous>, transform_indices = @transform_3, window_bounds = array<i64: 1, 128>}, {transform_indices = @transform_4, window_bounds = array<i64: 2, 128>}]} {
    %c0 = arith.constant 0 : index
    %c0_0 = arith.constant 0 : index
    %0 = vector.load %arg1[%c0, %c0_0] : memref<2x2048xbf16, #tpu.memory_space<vmem>>, vector<2x2048xbf16>
    %c0_1 = arith.constant 0 : index
    %c0_2 = arith.constant 0 : index
    %1 = vector.load %arg2[%c0_1, %c0_2] : memref<2048x256xbf16, #tpu.memory_space<vmem>>, vector<2048x256xbf16>
    %cst = arith.constant dense<0.000000e+00> : vector<2x256xf32>
    %2 = tpu.matmul %0, %1, %cst {dimension_numbers = #tpu.dot_dimension_numbers<[1], [0], [0], [1], [0, 0, 1, 1], [], []>} : vector<2x2048xbf16>, vector<2048x256xbf16>, vector<2x256xf32> -> vector<2x256xf32>
    %cst_3 = arith.constant 0.000000e+00 : f32
    %3 = vector.broadcast %cst_3 : f32 to vector<2x256xf32>
    %4 = arith.maximumf %2, %3 : vector<2x256xf32>
    %5 = arith.truncf %4 : vector<2x256xf32> to vector<2x256xbf16>
    %c0_4 = arith.constant 0 : index
    %c0_5 = arith.constant 0 : index
    %6 = vector.load %arg3[%c0_4, %c0_5] : memref<256x128xbf16, #tpu.memory_space<vmem>>, vector<256x128xbf16>
    %cst_6 = arith.constant dense<0.000000e+00> : vector<2x128xf32>
    %7 = tpu.matmul %5, %6, %cst_6 {dimension_numbers = #tpu.dot_dimension_numbers<[1], [0], [0], [1], [0, 0, 1, 1], [], []>} : vector<2x256xbf16>, vector<256x128xbf16>, vector<2x128xf32> -> vector<2x128xf32>
    %c0_7 = arith.constant 0 : index
    %c0_8 = arith.constant 0 : index
    %8 = vector.load %arg4[%c0_7, %c0_8] : memref<1x128xf32, #tpu.memory_space<vmem>>, vector<1x128xf32>
    %9 = vector.broadcast %8 : vector<1x128xf32> to vector<2x128xf32>
    %10 = arith.addf %7, %9 : vector<2x128xf32>
    %c0_9 = arith.constant 0 : index
    %c0_10 = arith.constant 0 : index
    %11 = vector.load %arg5[%c0_9, %c0_10] : memref<2x128xf32, #tpu.memory_space<vmem>>, vector<2x128xf32>
    tpu.vector_store %arg5[%c0_9, %c0_10], %10 {strides = array<i32>} : memref<2x128xf32, #tpu.memory_space<vmem>>, vector<2x128xf32>,
    return
  }
  func.func @transform_0(%arg0: i32) -> (i32, i32) {
    %c0_i32 = arith.constant 0 : i32
    %c0_i32_0 = arith.constant 0 : i32
    return %arg0, %c0_i32 : i32, i32
  }
  func.func @transform_1(%arg0: i32) -> (i32, i32) {
    %c0_i32 = arith.constant 0 : i32
    %c0_i32_0 = arith.constant 0 : i32
    %c0_i32_1 = arith.constant 0 : i32
    return %c0_i32, %c0_i32_0 : i32, i32
  }
  func.func @transform_2(%arg0: i32) -> (i32, i32) {
    %c0_i32 = arith.constant 0 : i32
    %c0_i32_0 = arith.constant 0 : i32
    %c0_i32_1 = arith.constant 0 : i32
    return %c0_i32, %c0_i32_0 : i32, i32
  }
  func.func @transform_3(%arg0: i32) -> (i32, i32) {
    %c0_i32 = arith.constant 0 : i32
    %c0_i32_0 = arith.constant 0 : i32
    %c0_i32_1 = arith.constant 0 : i32
    return %c0_i32, %c0_i32_0 : i32, i32
  }
  func.func @transform_4(%arg0: i32) -> (i32, i32) {
    %c0_i32 = arith.constant 0 : i32
    %c0_i32_0 = arith.constant 0 : i32
    return %arg0, %c0_i32 : i32, i32
  }
}

</mosaic_0001>

<bundles_post_ra>
// kernel: tpu_custom_call.1
= control target key start
LH: loop header
LB: loop body
LE: loop exit
PB: predicated region body
PF: predicated region fallthrough
CT: control target
= control target key end

     0   :  { %9 = vsyncpa [#allocation3], 0  ;;  %s3196_s0 = inlined_call_operand.hbm [shape: bf16[2,2048], index: 0, kind: input, shape index: {}]   ;;  %s3197_s1 = inlined_call_operand.hbm [shape: bf16[2048,256], index: 1, kind: input, shape index: {}]   ;;  %s3198_s2 = inlined_call_operand.hbm [shape: bf16[256,128], index: 2, kind: input, shape index: {}]   ;;  %s3199_s3 = inlined_call_operand.vmem [shape: f32[1,128], index: 3, kind: input, shape index: {}]   ;;  %s3200_s4 = inlined_call_operand.hbm [shape: f32[2,128], index: 4, kind: output, shape index: {}]  }
   0x1   :  { %10 = vsyncpa [#allocation6], 0 }
   0x2   :  { %11 = vsyncpa [#allocation4], 0  ;;  %s3062_s15 = smov [#allocation5]   ;;  %s2968_s19 = scalar_lea.hbm %s3197_s1, 32768 }
   0x3   :  { %s27_s16 = sshll.u32 %s3062_s15, 4  ;;  %p2969_p0 = scmp.ne.s32.totalorder %s3197_s1, %s2968_s19  ;;  %s28_s16 = int_to_ptr.vmem [resolvable:$true] %s27_s16 }
   0x4   :  { %p2972_p1 = scmp.lt.u32.totalorder %s2968_s19, %s3197_s1 }
   0x6   :  { %p2974_p2 = pnand %p2972_p1, %p2969_p0 }
   0x8   :  { %2977 = shalt.err (!%p2974_p2)
}
   0x9   :  { %s2978_s24 = scalar_lea.vmem %s28_s16, 32768  ;;  %p2983_p4 = scmp.lt.s32.totalorder %s28_s16, %s28_s16 }
   0xa   :  { %p2979_p3 = scmp.ne.s32.totalorder %s28_s16, %s2978_s24  ;;  %p2984_p5 = scmp.lt.s32.totalorder %s2978_s24, %s2978_s24 }
   0xc   :  { %p2985_p6 = por %p2984_p5, %p2983_p4 }
   0xe   :  { %p2986_p7 = pnand %p2985_p6, %p2979_p3 }
  0x10   :  { %2989 = shalt.err (!%p2986_p7)
}
  0x11   :  { %s3063_s25 = smov 128   ;;  %s3064_s26 = smov 8  }
  0x12   :  { %33 = dma.hbm_to_vmem [thread:$0]  %s3197_s1, 32768, %s28_s16, [#allocation6], %s3063_s25, %s3063_s25, %s3064_s26  }
  0x13   :  { %s3065_s29 = smov [#allocation2]   ;;  %s3066_s5 = smov [#allocation7]  }
  0x14   :  { %s18_s30 = sshll.u32 %s3065_s29, 4  ;;  %s39_s6 = sshll.u32 %s3066_s5, 4  ;;  %s19_s30 = int_to_ptr.vmem [resolvable:$true] %s18_s30  ;;  %s40_s6 = int_to_ptr.vmem [resolvable:$true] %s39_s6 }
  0x15   :  { %s2990_s9 = scalar_lea.hbm %s3196_s0, 256 }
  0x16   :  { %p2991_p8 = scmp.ne.s32.totalorder %s3196_s0, %s2990_s9  ;;  %p2994_p9 = scmp.lt.u32.totalorder %s2990_s9, %s3196_s0 }
  0x18   :  { %p2996_p10 = pnand %p2994_p9, %p2991_p8 }
  0x1a   :  { %2999 = shalt.err (!%p2996_p10)
}
  0x1b   :  { %s3000_s1 = scalar_lea.vmem %s19_s30, 256  ;;  %p3005_p12 = scmp.lt.s32.totalorder %s19_s30, %s19_s30 }
  0x1c   :  { %p3001_p11 = scmp.ne.s32.totalorder %s19_s30, %s3000_s1  ;;  %p3006_p13 = scmp.lt.s32.totalorder %s3000_s1, %s3000_s1 }
  0x1e   :  { %p3007_p0 = por %p3006_p13, %p3005_p12 }
  0x20   :  { %p3008_p1 = pnand %p3007_p0, %p3001_p11 }
  0x22   :  { %3011 = shalt.err (!%p3008_p1)
}
  0x23   :  { %21 = dma.hbm_to_vmem [thread:$0]  %s3196_s0, 256, %s19_s30, [#allocation3]  }
  0x24   :  { %s3012_s18 = scalar_lea.hbm %s3198_s2, 2048 }
  0x25   :  { %p3013_p2 = scmp.ne.s32.totalorder %s3198_s2, %s3012_s18  ;;  %p3016_p3 = scmp.lt.u32.totalorder %s3012_s18, %s3198_s2 }
  0x27   :  { %p3018_p4 = pnand %p3016_p3, %p3013_p2 }
  0x29   :  { %3021 = shalt.err (!%p3018_p4)
}
  0x2a   :  { %s3022_s23 = scalar_lea.vmem %s40_s6, 2048  ;;  %p3027_p6 = scmp.lt.s32.totalorder %s40_s6, %s40_s6 }
  0x2b   :  { %p3023_p5 = scmp.ne.s32.totalorder %s40_s6, %s3022_s23  ;;  %p3028_p7 = scmp.lt.s32.totalorder %s3022_s23, %s3022_s23 }
  0x2d   :  { %p3029_p8 = por %p3028_p7, %p3027_p6 }
  0x2f   :  { %p3030_p9 = pnand %p3029_p8, %p3023_p5 }
  0x31   :  { %3033 = shalt.err (!%p3030_p9)
}
  0x32   :  { %s3067_s0 = smov 64   ;;  %s3068_s24 = smov 4  }
  0x33   :  { %45 = dma.hbm_to_vmem [thread:$0]  %s3198_s2, 2048, %s40_s6, [#allocation6], %s3067_s0, %s3067_s0, %s3068_s24  }
  0x34   :  { %3056 = dma.done.wait [#allocation3], 256  }
  0x35   :  { %3057 = vsyncadd [#allocation3], 4294967040 }
  0x36   :  { %3058 = dma.done.wait [#allocation6], 34816  }
  0x37   :  { %3059 = vsyncadd [#allocation6], 4294932480  ;;  %v2566_v0 = vld [vmem:[#allocation5 + $0x4] ss:$8 sps:$4 sm:$0xff]   ;;  %v2570_v2 = vld [vmem:[#allocation5] ss:$8 sps:$4 sm:$0xff]   ;;  %v322_v38 = vlaneseq }
  0x38   :  { %v2568_v1 = vld [vmem:[#allocation5 + $0x404] ss:$8 sps:$4 sm:$0xff]   ;;  %1712 = vmatprep.subr.bf16.mxu1 %v2566_v0  ;;  %v2571_v3 = vld [vmem:[#allocation5 + $0x400] ss:$8 sps:$4 sm:$0xff]   ;;  %v2572_v4 = vld [vmem:[#allocation5 + $0x14] ss:$8 sps:$4 sm:$0xff]  }
  0x39   :  { %1876 = vmatprep.subr.bf16.mxu0 %v2568_v1  ;;  %1713 = vmatpush1.bf16.msra.mxu1 %v2570_v2  ;;  %v2574_v5 = vld [vmem:[#allocation5 + $0x414] ss:$8 sps:$4 sm:$0xff]   ;;  %v2576_v6 = vld [vmem:[#allocation5 + $0x10] ss:$8 sps:$4 sm:$0xff]   ;;  %v2578_v8 = vld [vmem:[#allocation5 + $0x24] ss:$8 sps:$4 sm:$0xff]  }
  0x3a   :  { %1877 = vmatpush1.bf16.msra.mxu0 %v2571_v3  ;;  %1714 = vmatprep.subr.bf16.mxu1 %v2572_v4  ;;  %v2577_v7 = vld [vmem:[#allocation5 + $0x410] ss:$8 sps:$4 sm:$0xff]   ;;  %v2580_v9 = vld [vmem:[#allocation5 + $0x424] ss:$8 sps:$4 sm:$0xff]   ;;  %v2582_v10 = vld [vmem:[#allocation5 + $0x20] ss:$8 sps:$4 sm:$0xff]  }
  0x3b   :  { %1878 = vmatprep.subr.bf16.mxu0 %v2574_v5  ;;  %v2583_v11 = vld [vmem:[#allocation5 + $0x420] ss:$8 sps:$4 sm:$0xff]   ;;  %v2584_v12 = vld [vmem:[#allocation5 + $0x34] ss:$8 sps:$4 sm:$0xff]   ;;  %v2588_v14 = vld [vmem:[#allocation5 + $0x30] ss:$8 sps:$4 sm:$0xff]  }
  0x3c   :  { %v2586_v13 = vld [vmem:[#allocation5 + $0x434] ss:$8 sps:$4 sm:$0xff]   ;;  %v2589_v15 = vld [vmem:[#allocation5 + $0x430] ss:$8 sps:$4 sm:$0xff]   ;;  %v2590_v16 = vld [vmem:[#allocation5 + $0x44] ss:$8 sps:$4 sm:$0xff]  }
  0x3d   :  { %1715 = vmatpush1.bf16.msra.mxu1 %v2576_v6  ;;  %v2592_v17 = vld [vmem:[#allocation5 + $0x444] ss:$8 sps:$4 sm:$0xff]   ;;  %v2594_v18 = vld [vmem:[#allocation5 + $0x40] ss:$8 sps:$4 sm:$0xff]   ;;  %v2596_v20 = vld [vmem:[#allocation5 + $0x54] ss:$8 sps:$4 sm:$0xff]  }
  0x3e   :  { %1879 = vmatpush1.bf16.msra.mxu0 %v2577_v7  ;;  %1716 = vmatprep.subr.bf16.mxu1 %v2578_v8  ;;  %v2595_v19 = vld [vmem:[#allocation5 + $0x440] ss:$8 sps:$4 sm:$0xff]   ;;  %v2598_v21 = vld [vmem:[#allocation5 + $0x454] ss:$8 sps:$4 sm:$0xff]   ;;  %v2600_v22 = vld [vmem:[#allocation5 + $0x50] ss:$8 sps:$4 sm:$0xff]  }
  0x3f   :  { %1880 = vmatprep.subr.bf16.mxu0 %v2580_v9  ;;  %v2601_v23 = vld [vmem:[#allocation5 + $0x450] ss:$8 sps:$4 sm:$0xff]   ;;  %v2602_v24 = vld [vmem:[#allocation5 + $0x64] ss:$8 sps:$4 sm:$0xff]   ;;  %v2606_v26 = vld [vmem:[#allocation5 + $0x60] ss:$8 sps:$4 sm:$0xff]  }
  0x40   :  { %v2604_v25 = vld [vmem:[#allocation5 + $0x464] ss:$8 sps:$4 sm:$0xff]   ;;  %v2607_v27 = vld [vmem:[#allocation5 + $0x460] ss:$8 sps:$4 sm:$0xff]   ;;  %v2608_v28 = vld [vmem:[#allocation5 + $0x74] ss:$8 sps:$4 sm:$0xff]  }
  0x41   :  { %1717 = vmatpush1.bf16.msra.mxu1 %v2582_v10  ;;  %v2610_v29 = vld [vmem:[#allocation5 + $0x474] ss:$8 sps:$4 sm:$0xff]   ;;  %v2612_v30 = vld [vmem:[#allocation5 + $0x70] ss:$8 sps:$4 sm:$0xff]   ;;  %v2614_v32 = vld [vmem:[#allocation5 + $0x84] ss:$8 sps:$4 sm:$0xff]  }
  0x42   :  { %1881 = vmatpush1.bf16.msra.mxu0 %v2583_v11  ;;  %1718 = vmatprep.subr.bf16.mxu1 %v2584_v12  ;;  %v2613_v31 = vld [vmem:[#allocation5 + $0x470] ss:$8 sps:$4 sm:$0xff]   ;;  %v2616_v33 = vld [vmem:[#allocation5 + $0x484] ss:$8 sps:$4 sm:$0xff]   ;;  %v2618_v34 = vld [vmem:[#allocation5 + $0x80] ss:$8 sps:$4 sm:$0xff]  }
  0x43   :  { %1882 = vmatprep.subr.bf16.mxu0 %v2586_v13  ;;  %v2619_v35 = vld [vmem:[#allocation5 + $0x480] ss:$8 sps:$4 sm:$0xff]   ;;  %v3069_v36 = vmov 1966171168   ;;  %v2620_v39 = vld [vmem:[#allocation5 + $0x94] ss:$8 sps:$4 sm:$0xff]  }
  0x44   :  { %v320_v37 = vunpack.c.l.s4 %v3069_v36  ;;  %v2622_v40 = vld [vmem:[#allocation5 + $0x494] ss:$8 sps:$4 sm:$0xff]   ;;  %v2624_v41 = vld [vmem:[#allocation5 + $0x90] ss:$8 sps:$4 sm:$0xff]   ;;  %v323_v43 = vshrl.u32 %v322_v38, 7  ;;  %s3070_s28 = smov [#allocation8]  }
  0x45   :  { %1719 = vmatpush1.bf16.msra.mxu1 %v2588_v14  ;;  %v2625_v44 = vld [vmem:[#allocation5 + $0x490] ss:$8 sps:$4 sm:$0xff]   ;;  %v2626_v45 = vld [vmem:[#allocation5 + $0xa4] ss:$8 sps:$4 sm:$0xff]   ;;  %v2630_v47 = vld [vmem:[#allocation5 + $0xa0] ss:$8 sps:$4 sm:$0xff]  }
  0x46   :  { %1883 = vmatpush1.bf16.msra.mxu0 %v2589_v15  ;;  %1720 = vmatprep.subr.bf16.mxu1 %v2590_v16  ;;  %v321_v42 = vunpack.c.0.s8 %v320_v37  ;;  %v2628_v46 = vld [vmem:[#allocation5 + $0x4a4] ss:$8 sps:$4 sm:$0xff]   ;;  %v2631_v48 = vld [vmem:[#allocation5 + $0x4a0] ss:$8 sps:$4 sm:$0xff]   ;;  %v2632_v50 = vld [vmem:[#allocation5 + $0xb4] ss:$8 sps:$4 sm:$0xff]  }
  0x47   :  { %1884 = vmatprep.subr.bf16.mxu0 %v2592_v17  ;;  %v2634_v51 = vld [vmem:[#allocation5 + $0x4b4] ss:$8 sps:$4 sm:$0xff]   ;;  %v2636_v53 = vld [vmem:[#allocation5 + $0xb0] ss:$8 sps:$4 sm:$0xff]   ;;  %v2638_v57 = vld [vmem:[#allocation5 + $0xc4] ss:$8 sps:$4 sm:$0xff]  }
  0x48   :  { %v3132_v49 = vsub.s32 %v321_v42, %v323_v43  ;;  %v58_v52 = vld [vmem:[#allocation2] sm:$0xff]  ;;  %v59_v56 = vld [vmem:[#allocation2 + $0x8] sm:$0xff]  ;;  %v2640_v58 = vld [vmem:[#allocation5 + $0x4c4] ss:$8 sps:$4 sm:$0xff]   ;;  %s2226_s29 = sshll.u32 %s3070_s28, 4  ;;  %s2227_s29 = int_to_ptr.vmem [resolvable:$true] %s2226_s29 }
  0x49   :  { %1721 = vmatpush1.bf16.msra.mxu1 %v2594_v18  ;;  %v2637_v55 = vld [vmem:[#allocation5 + $0x4b0] ss:$8 sps:$4 sm:$0xff]   ;;  %v2642_v63 = vld [vmem:[#allocation5 + $0xc0] ss:$8 sps:$4 sm:$0xff]   ;;  %v2644_v1 = vld [vmem:[#allocation5 + $0xd4] ss:$8 sps:$4 sm:$0xff]   ;;  %v318_v12 = vcombine.high %v58_v52, %v58_v52  ;;  %v367_v13 = vcombine.high %v59_v56, %v59_v56  ;;  %p3039_p11 = scmp.lt.s32.totalorder %s2227_s29, %s2227_s29 }
  0x4a   :  { %1885 = vmatpush1.bf16.msra.mxu0 %v2595_v19  ;;  %1722 = vmatprep.subr.bf16.mxu1 %v2596_v20  ;;  %v325_v54 = vrot.slane %v58_v52, %v3132_v49  ;;  %v374_v60 = vrot.slane %v59_v56, %v3132_v49  ;;  %v2643_v0 = vld [vmem:[#allocation5 + $0x4c0] ss:$8 sps:$4 sm:$0xff]   ;;  %v2646_v2 = vld [vmem:[#allocation5 + $0x4d4] ss:$8 sps:$4 sm:$0xff]   ;;  %v2648_v4 = vld [vmem:[#allocation5 + $0xd0] ss:$8 sps:$4 sm:$0xff]  }
  0x4b   :  { %1886 = vmatprep.subr.bf16.mxu0 %v2598_v21  ;;  %v2649_v5 = vld [vmem:[#allocation5 + $0x4d0] ss:$8 sps:$4 sm:$0xff]   ;;  %v2650_v6 = vld [vmem:[#allocation5 + $0xe4] ss:$8 sps:$4 sm:$0xff]   ;;  %v2654_v8 = vld [vmem:[#allocation5 + $0xe0] ss:$8 sps:$4 sm:$0xff]   ;;  %v332_v18 = vrot.slane %v318_v12, %v3132_v49  ;;  %v381_v19 = vrot.slane %v367_v13, %v3132_v49 }
  0x4c   :  { %v333_v59 = vcombine.high %v325_v54, %v325_v54  ;;  %v382_v62 = vcombine.high %v374_v60, %v374_v60  ;;  %v2652_v7 = vld [vmem:[#allocation5 + $0x4e4] ss:$8 sps:$4 sm:$0xff]   ;;  %v2655_v9 = vld [vmem:[#allocation5 + $0x4e0] ss:$8 sps:$4 sm:$0xff]   ;;  %v2656_v10 = vld [vmem:[#allocation5 + $0xf4] ss:$8 sps:$4 sm:$0xff]   ;;  %v3144_v20 = vrot.slane %v325_v54, %v3132_v49  ;;  %v3147_v21 = vrot.slane %v374_v60, %v3132_v49 }
  0x4d   :  { %1723 = vmatpush1.bf16.msra.mxu1 %v2600_v22  ;;  %v2658_v11 = vld [vmem:[#allocation5 + $0x4f4] ss:$8 sps:$4 sm:$0xff]   ;;  %v2660_v14 = vld [vmem:[#allocation5 + $0xf0] ss:$8 sps:$4 sm:$0xff]   ;;  %v2665_v16 = vld [vmem:[#allocation5 + $0x104] ss:$8 sps:$4 sm:$0xff]   ;;  %v334_v22 = vcombine.high %v332_v18, %v332_v18 }
  0x4e   :  { %1887 = vmatpush1.bf16.msra.mxu0 %v2601_v23  ;;  %1724 = vmatprep.subr.bf16.mxu1 %v2602_v24  ;;  %v3137_v61 = vrot.slane %v333_v59, %v3132_v49  ;;  %v404_v3 = vrot.slane %v382_v62, %v3132_v49  ;;  %v2661_v15 = vld [vmem:[#allocation5 + $0x4f0] ss:$8 sps:$4 sm:$0xff]   ;;  %v2669_v17 = vld [vmem:[#allocation5 + $0x504] ss:$8 sps:$4 sm:$0xff]   ;;  %v383_v23 = vcombine.high %v381_v19, %v381_v19  ;;  %v2663_v24 = vld [vmem:[#allocation5 + $0x100] ss:$8 sps:$4 sm:$0xff]  }
  0x4f   :  { %1888 = vmatprep.subr.bf16.mxu0 %v2604_v25  ;;  %v2667_v25 = vld [vmem:[#allocation5 + $0x500] ss:$8 sps:$4 sm:$0xff]   ;;  %v2678_v36 = vld [vmem:[#allocation5 + $0x124] ss:$8 sps:$4 sm:$0xff]   ;;  %v2682_v42 = vld [vmem:[#allocation5 + $0x130] ss:$8 sps:$4 sm:$0xff]  }
  0x50   :  { %1744 = vmatprep.mubr.bf16.mxu1 %v3137_v61  ;;  %1908 = vmatprep.mubr.bf16.mxu0 %v404_v3  ;;  %v2681_v37 = vld [vmem:[#allocation5 + $0x524] ss:$8 sps:$4 sm:$0xff]   ;;  %v2676_v38 = vld [vmem:[#allocation5 + $0x120] ss:$8 sps:$4 sm:$0xff]   ;;  %v2685_v43 = vld [vmem:[#allocation5 + $0x530] ss:$8 sps:$4 sm:$0xff]  }
  0x51   :  { %1725 = vmatpush1.bf16.msra.mxu1 %v2606_v26  ;;  %v2672_v26 = vld [vmem:[#allocation5 + $0x114] ss:$8 sps:$4 sm:$0xff]   ;;  %v2702_v52 = vld [vmem:[#allocation5 + $0x164] ss:$8 sps:$4 sm:$0xff]   ;;  %v2700_v54 = vld [vmem:[#allocation5 + $0x160] ss:$8 sps:$4 sm:$0xff]  }
  0x52   :  { %1889 = vmatpush1.bf16.msra.mxu0 %v2607_v27  ;;  %1726 = vmatprep.subr.bf16.mxu1 %v2608_v28  ;;  %v2675_v27 = vld [vmem:[#allocation5 + $0x514] ss:$8 sps:$4 sm:$0xff]   ;;  %v3150_v28 = vrot.slane %v334_v22, %v3132_v49  ;;  %v2709_v59 = vld [vmem:[#allocation5 + $0x570] ss:$8 sps:$4 sm:$0xff]   ;;  %v2714_v60 = vld [vmem:[#allocation5 + $0x184] ss:$8 sps:$4 sm:$0xff]  }
  0x53   :  { %1890 = vmatprep.subr.bf16.mxu0 %v2610_v29  ;;  %v3153_v29 = vrot.slane %v383_v23, %v3132_v49  ;;  %v2708_v56 = vld [vmem:[#allocation5 + $0x174] ss:$8 sps:$4 sm:$0xff]   ;;  %v2712_v62 = vld [vmem:[#allocation5 + $0x180] ss:$8 sps:$4 sm:$0xff]   ;;  %v2738_v12 = vld [vmem:[#allocation5 + $0x1c4] ss:$8 sps:$4 sm:$0xff]  }
  0x54   :  { %v2741_v13 = vld [vmem:[#allocation5 + $0x5c4] ss:$8 sps:$4 sm:$0xff]   ;;  %s3034_s30 = scalar_lea.vmem %s2227_s29, 32 }
  0x55   :  { %1727 = vmatpush1.bf16.msra.mxu1 %v2612_v30  ;;  %v3156_v30 = vrot.slane %v332_v18, %v3132_v49  ;;  %v2742_v18 = vld [vmem:[#allocation5 + $0x1d0] ss:$8 sps:$4 sm:$0xff]   ;;  %v2750_v22 = vld [vmem:[#allocation5 + $0x1e4] ss:$8 sps:$4 sm:$0xff]   ;;  %p3035_p10 = scmp.ne.s32.totalorder %s2227_s29, %s3034_s30  ;;  %p3040_p12 = scmp.lt.s32.totalorder %s3034_s30, %s3034_s30 }
  0x56   :  { %1891 = vmatpush1.bf16.msra.mxu0 %v2613_v31  ;;  %1728 = vmatprep.subr.bf16.mxu1 %v2614_v32  ;;  %v365_v31 = vcombine.high %v3137_v61, %v3137_v61  ;;  %v414_v32 = vcombine.high %v404_v3, %v404_v3  ;;  %v2717_v61 = vld [vmem:[#allocation5 + $0x584] ss:$8 sps:$4 sm:$0xff]   ;;  %v2721_v3 = vld [vmem:[#allocation5 + $0x590] ss:$8 sps:$4 sm:$0xff]  }
  0x57   :  { %1892 = vmatprep.subr.bf16.mxu0 %v2616_v33  ;;  %v3161_v33 = vrot.slane %v381_v19, %v3132_v49  ;;  %v2699_v49 = vld [vmem:[#allocation5 + $0x554] ss:$8 sps:$4 sm:$0xff]   ;;  %v2745_v19 = vld [vmem:[#allocation5 + $0x5d0] ss:$8 sps:$4 sm:$0xff]   ;;  %v2753_v23 = vld [vmem:[#allocation5 + $0x5e4] ss:$8 sps:$4 sm:$0xff]   ;;  %p3041_p13 = por %p3040_p12, %p3039_p11 }
  0x59   :  { %1729 = vmatpush1.bf16.msra.mxu1 %v2618_v34  ;;  %v2670_v34 = vld [vmem:[#allocation5 + $0x110] ss:$8 sps:$4 sm:$0xff]   ;;  %p3042_p0 = pnand %p3041_p13, %p3035_p10 }
  0x5a   :  { %1893 = vmatpush1.bf16.msra.mxu0 %v2619_v35  ;;  %1730 = vmatprep.subr.bf16.mxu1 %v2620_v39  ;;  %v2673_v35 = vld [vmem:[#allocation5 + $0x510] ss:$8 sps:$4 sm:$0xff]   ;;  %v2679_v39 = vld [vmem:[#allocation5 + $0x520] ss:$8 sps:$4 sm:$0xff]  }
  0x5b   :  { %1894 = vmatprep.subr.bf16.mxu0 %v2622_v40  ;;  %v2684_v40 = vld [vmem:[#allocation5 + $0x134] ss:$8 sps:$4 sm:$0xff]  }
  0x5d   :  { %1731 = vmatpush1.bf16.msra.mxu1 %v2624_v41  ;;  %v2687_v41 = vld [vmem:[#allocation5 + $0x534] ss:$8 sps:$4 sm:$0xff]  }
  0x5e   :  { %1895 = vmatpush1.bf16.msra.mxu0 %v2625_v44  ;;  %1732 = vmatprep.subr.bf16.mxu1 %v2626_v45  ;;  %v2690_v44 = vld [vmem:[#allocation5 + $0x144] ss:$8 sps:$4 sm:$0xff]  }
  0x5f   :  { %1896 = vmatprep.subr.bf16.mxu0 %v2628_v46  ;;  %v2693_v45 = vld [vmem:[#allocation5 + $0x544] ss:$8 sps:$4 sm:$0xff]   ;;  %v2688_v46 = vld [vmem:[#allocation5 + $0x140] ss:$8 sps:$4 sm:$0xff]  }
  0x61   :  { %1733 = vmatpush1.bf16.msra.mxu1 %v2630_v47  ;;  %v2691_v47 = vld [vmem:[#allocation5 + $0x540] ss:$8 sps:$4 sm:$0xff]  }
  0x62   :  { %1897 = vmatpush1.bf16.msra.mxu0 %v2631_v48  ;;  %1734 = vmatprep.subr.bf16.mxu1 %v2632_v50  ;;  %v2696_v48 = vld [vmem:[#allocation5 + $0x154] ss:$8 sps:$4 sm:$0xff]   ;;  %v2694_v50 = vld [vmem:[#allocation5 + $0x150] ss:$8 sps:$4 sm:$0xff]  }
  0x63   :  { %1898 = vmatprep.subr.bf16.mxu0 %v2634_v51  ;;  %v2697_v51 = vld [vmem:[#allocation5 + $0x550] ss:$8 sps:$4 sm:$0xff]  }
  0x65   :  { %1735 = vmatpush1.bf16.msra.mxu1 %v2636_v53  ;;  %v2705_v53 = vld [vmem:[#allocation5 + $0x564] ss:$8 sps:$4 sm:$0xff]  }
  0x66   :  { %1899 = vmatpush1.bf16.msra.mxu0 %v2637_v55  ;;  %1736 = vmatprep.subr.bf16.mxu1 %v2638_v57  ;;  %v2703_v55 = vld [vmem:[#allocation5 + $0x560] ss:$8 sps:$4 sm:$0xff]   ;;  %v2711_v57 = vld [vmem:[#allocation5 + $0x574] ss:$8 sps:$4 sm:$0xff]  }
  0x67   :  { %1900 = vmatprep.subr.bf16.mxu0 %v2640_v58  ;;  %v2706_v58 = vld [vmem:[#allocation5 + $0x170] ss:$8 sps:$4 sm:$0xff]  }
  0x69   :  { %1737 = vmatpush1.bf16.msra.mxu1 %v2642_v63  ;;  %v2715_v63 = vld [vmem:[#allocation5 + $0x580] ss:$8 sps:$4 sm:$0xff]  }
  0x6a   :  { %1901 = vmatpush1.bf16.msra.mxu0 %v2643_v0  ;;  %1738 = vmatprep.subr.bf16.mxu1 %v2644_v1  ;;  %v2720_v0 = vld [vmem:[#allocation5 + $0x194] ss:$8 sps:$4 sm:$0xff]  }
  0x6b   :  { %1902 = vmatprep.subr.bf16.mxu0 %v2646_v2  ;;  %v2723_v1 = vld [vmem:[#allocation5 + $0x594] ss:$8 sps:$4 sm:$0xff]   ;;  %v2718_v2 = vld [vmem:[#allocation5 + $0x190] ss:$8 sps:$4 sm:$0xff]  }
  0x6d   :  { %1739 = vmatpush1.bf16.msra.mxu1 %v2648_v4  ;;  %v2726_v4 = vld [vmem:[#allocation5 + $0x1a4] ss:$8 sps:$4 sm:$0xff]  }
  0x6e   :  { %1903 = vmatpush1.bf16.msra.mxu0 %v2649_v5  ;;  %1740 = vmatprep.subr.bf16.mxu1 %v2650_v6  ;;  %v2729_v5 = vld [vmem:[#allocation5 + $0x5a4] ss:$8 sps:$4 sm:$0xff]   ;;  %v2724_v6 = vld [vmem:[#allocation5 + $0x1a0] ss:$8 sps:$4 sm:$0xff]  }
  0x6f   :  { %1904 = vmatprep.subr.bf16.mxu0 %v2652_v7  ;;  %v2727_v7 = vld [vmem:[#allocation5 + $0x5a0] ss:$8 sps:$4 sm:$0xff]  }
  0x71   :  { %1741 = vmatpush1.bf16.msra.mxu1 %v2654_v8  ;;  %v2732_v8 = vld [vmem:[#allocation5 + $0x1b4] ss:$8 sps:$4 sm:$0xff]  }
  0x72   :  { %1905 = vmatpush1.bf16.msra.mxu0 %v2655_v9  ;;  %1742 = vmatprep.subr.bf16.mxu1 %v2656_v10  ;;  %v2735_v9 = vld [vmem:[#allocation5 + $0x5b4] ss:$8 sps:$4 sm:$0xff]   ;;  %v2730_v10 = vld [vmem:[#allocation5 + $0x1b0] ss:$8 sps:$4 sm:$0xff]  }
  0x73   :  { %1906 = vmatprep.subr.bf16.mxu0 %v2658_v11  ;;  %v2733_v11 = vld [vmem:[#allocation5 + $0x5b0] ss:$8 sps:$4 sm:$0xff]  }
  0x75   :  { %1743 = vmatpush1.bf16.msra.mxu1 %v2660_v14  ;;  %v2736_v14 = vld [vmem:[#allocation5 + $0x1c0] ss:$8 sps:$4 sm:$0xff]  }
  0x76   :  { %1907 = vmatpush1.bf16.msra.mxu0 %v2661_v15  ;;  %1753 = vmatprep.subr.bf16.mxu1 %v2665_v16  ;;  %v2739_v15 = vld [vmem:[#allocation5 + $0x5c0] ss:$8 sps:$4 sm:$0xff]   ;;  %v2744_v16 = vld [vmem:[#allocation5 + $0x1d4] ss:$8 sps:$4 sm:$0xff]  }
  0x77   :  { %1917 = vmatprep.subr.bf16.mxu0 %v2669_v17  ;;  %v2747_v17 = vld [vmem:[#allocation5 + $0x5d4] ss:$8 sps:$4 sm:$0xff]  }
  0x78   :  { %1745 = vmatmul.mubr.bf16.vlgmr.msra.gmra.mrb[0].mxu1 %v3144_v20 }
  0x79   :  { %1909 = vmatmul.mubr.bf16.vlgmr.msra.gmra.mrb[0].mxu0 %v3147_v21  ;;  %1754 = vmatpush1.bf16.msra.mxu1 %v2663_v24  ;;  %v2748_v24 = vld [vmem:[#allocation5 + $0x1e0] ss:$8 sps:$4 sm:$0xff]  }
  0x7a   :  { %1918 = vmatpush1.bf16.msra.mxu0 %v2667_v25  ;;  %1755 = vmatprep.subr.bf16.mxu1 %v2672_v26  ;;  %v2751_v25 = vld [vmem:[#allocation5 + $0x5e0] ss:$8 sps:$4 sm:$0xff]   ;;  %v2756_v26 = vld [vmem:[#allocation5 + $0x1f4] ss:$8 sps:$4 sm:$0xff]  }
  0x7b   :  { %1919 = vmatprep.subr.bf16.mxu0 %v2675_v27  ;;  %1785 = vmatprep.mubr.bf16.mxu1 %v365_v31  ;;  %v2759_v27 = vld [vmem:[#allocation5 + $0x5f4] ss:$8 sps:$4 sm:$0xff]   ;;  %v2754_v31 = vld [vmem:[#allocation5 + $0x1f0] ss:$8 sps:$4 sm:$0xff]  }
  0x7c   :  { %1949 = vmatprep.mubr.bf16.mxu0 %v414_v32  ;;  %v2757_v32 = vld [vmem:[#allocation5 + $0x5f0] ss:$8 sps:$4 sm:$0xff]  }
  0x7d   :  { %1756 = vmatpush1.bf16.msra.mxu1 %v2670_v34  ;;  %v2762_v34 = vld [vmem:[#allocation5 + $0x204] ss:$8 sps:$4 sm:$0xff]  }
  0x7e   :  { %1920 = vmatpush1.bf16.msra.mxu0 %v2673_v35  ;;  %1757 = vmatprep.subr.bf16.mxu1 %v2678_v36  ;;  %v2765_v35 = vld [vmem:[#allocation5 + $0x604] ss:$8 sps:$4 sm:$0xff]   ;;  %v363_v36 = vcombine.high %v3144_v20, %v3144_v20 }
  0x7f   :  { %1921 = vmatprep.subr.bf16.mxu0 %v2681_v37  ;;  %v412_v37 = vcombine.high %v3147_v21, %v3147_v21  ;;  %v2774_v20 = vld [vmem:[#allocation5 + $0x224] ss:$8 sps:$4 sm:$0xff]   ;;  %v2772_v21 = vld [vmem:[#allocation5 + $0x220] ss:$8 sps:$4 sm:$0xff]  }
  0x81   :  { %1758 = vmatpush1.bf16.msra.mxu1 %v2676_v38  ;;  %v2760_v38 = vld [vmem:[#allocation5 + $0x200] ss:$8 sps:$4 sm:$0xff]  }
  0x82   :  { %1922 = vmatpush1.bf16.msra.mxu0 %v2679_v39  ;;  %1759 = vmatprep.subr.bf16.mxu1 %v2684_v40  ;;  %v2763_v39 = vld [vmem:[#allocation5 + $0x600] ss:$8 sps:$4 sm:$0xff]   ;;  %v2768_v40 = vld [vmem:[#allocation5 + $0x214] ss:$8 sps:$4 sm:$0xff]  }
  0x83   :  { %1923 = vmatprep.subr.bf16.mxu0 %v2687_v41  ;;  %v2771_v41 = vld [vmem:[#allocation5 + $0x614] ss:$8 sps:$4 sm:$0xff]  }
  0x85   :  { %1760 = vmatpush1.bf16.msra.mxu1 %v2682_v42  ;;  %v2766_v42 = vld [vmem:[#allocation5 + $0x210] ss:$8 sps:$4 sm:$0xff]  }
  0x86   :  { %1924 = vmatpush1.bf16.msra.mxu0 %v2685_v43  ;;  %1761 = vmatprep.subr.bf16.mxu1 %v2690_v44  ;;  %v2769_v43 = vld [vmem:[#allocation5 + $0x610] ss:$8 sps:$4 sm:$0xff]   ;;  %v2777_v44 = vld [vmem:[#allocation5 + $0x624] ss:$8 sps:$4 sm:$0xff]  }
  0x87   :  { %1925 = vmatprep.subr.bf16.mxu0 %v2693_v45  ;;  %v2775_v45 = vld [vmem:[#allocation5 + $0x620] ss:$8 sps:$4 sm:$0xff]  }
  0x89   :  { %1762 = vmatpush1.bf16.msra.mxu1 %v2688_v46  ;;  %v2780_v46 = vld [vmem:[#allocation5 + $0x234] ss:$8 sps:$4 sm:$0xff]  }
  0x8a   :  { %1926 = vmatpush1.bf16.msra.mxu0 %v2691_v47  ;;  %1763 = vmatprep.subr.bf16.mxu1 %v2696_v48  ;;  %v2783_v47 = vld [vmem:[#allocation5 + $0x634] ss:$8 sps:$4 sm:$0xff]   ;;  %v2778_v48 = vld [vmem:[#allocation5 + $0x230] ss:$8 sps:$4 sm:$0xff]  }
  0x8b   :  { %1927 = vmatprep.subr.bf16.mxu0 %v2699_v49  ;;  %v2781_v49 = vld [vmem:[#allocation5 + $0x630] ss:$8 sps:$4 sm:$0xff]  }
  0x8d   :  { %1764 = vmatpush1.bf16.msra.mxu1 %v2694_v50  ;;  %v2786_v50 = vld [vmem:[#allocation5 + $0x244] ss:$8 sps:$4 sm:$0xff]  }
  0x8e   :  { %1928 = vmatpush1.bf16.msra.mxu0 %v2697_v51  ;;  %1765 = vmatprep.subr.bf16.mxu1 %v2702_v52  ;;  %v2789_v51 = vld [vmem:[#allocation5 + $0x644] ss:$8 sps:$4 sm:$0xff]   ;;  %v2784_v52 = vld [vmem:[#allocation5 + $0x240] ss:$8 sps:$4 sm:$0xff]  }
  0x8f   :  { %1929 = vmatprep.subr.bf16.mxu0 %v2705_v53  ;;  %v2787_v53 = vld [vmem:[#allocation5 + $0x640] ss:$8 sps:$4 sm:$0xff]  }
  0x91   :  { %1766 = vmatpush1.bf16.msra.mxu1 %v2700_v54  ;;  %v2792_v54 = vld [vmem:[#allocation5 + $0x254] ss:$8 sps:$4 sm:$0xff]  }
  0x92   :  { %1930 = vmatpush1.bf16.msra.mxu0 %v2703_v55  ;;  %1767 = vmatprep.subr.bf16.mxu1 %v2708_v56  ;;  %v2795_v55 = vld [vmem:[#allocation5 + $0x654] ss:$8 sps:$4 sm:$0xff]   ;;  %v2790_v56 = vld [vmem:[#allocation5 + $0x250] ss:$8 sps:$4 sm:$0xff]  }
  0x93   :  { %1931 = vmatprep.subr.bf16.mxu0 %v2711_v57  ;;  %v2793_v57 = vld [vmem:[#allocation5 + $0x650] ss:$8 sps:$4 sm:$0xff]  }
  0x95   :  { %1768 = vmatpush1.bf16.msra.mxu1 %v2706_v58  ;;  %v2798_v58 = vld [vmem:[#allocation5 + $0x264] ss:$8 sps:$4 sm:$0xff]  }
  0x96   :  { %1932 = vmatpush1.bf16.msra.mxu0 %v2709_v59  ;;  %1769 = vmatprep.subr.bf16.mxu1 %v2714_v60  ;;  %v2801_v59 = vld [vmem:[#allocation5 + $0x664] ss:$8 sps:$4 sm:$0xff]   ;;  %v2796_v60 = vld [vmem:[#allocation5 + $0x260] ss:$8 sps:$4 sm:$0xff]  }
  0x97   :  { %1933 = vmatprep.subr.bf16.mxu0 %v2717_v61  ;;  %v2799_v61 = vld [vmem:[#allocation5 + $0x660] ss:$8 sps:$4 sm:$0xff]  }
  0x99   :  { %1770 = vmatpush1.bf16.msra.mxu1 %v2712_v62  ;;  %v2804_v62 = vld [vmem:[#allocation5 + $0x274] ss:$8 sps:$4 sm:$0xff]  }
  0x9a   :  { %1934 = vmatpush1.bf16.msra.mxu0 %v2715_v63  ;;  %1771 = vmatprep.subr.bf16.mxu1 %v2720_v0  ;;  %v2807_v63 = vld [vmem:[#allocation5 + $0x674] ss:$8 sps:$4 sm:$0xff]   ;;  %v2802_v0 = vld [vmem:[#allocation5 + $0x270] ss:$8 sps:$4 sm:$0xff]  }
  0x9b   :  { %1935 = vmatprep.subr.bf16.mxu0 %v2723_v1  ;;  %v2805_v1 = vld [vmem:[#allocation5 + $0x670] ss:$8 sps:$4 sm:$0xff]  }
  0x9d   :  { %1772 = vmatpush1.bf16.msra.mxu1 %v2718_v2  ;;  %v2810_v2 = vld [vmem:[#allocation5 + $0x284] ss:$8 sps:$4 sm:$0xff]  }
  0x9e   :  { %1936 = vmatpush1.bf16.msra.mxu0 %v2721_v3  ;;  %1773 = vmatprep.subr.bf16.mxu1 %v2726_v4  ;;  %v2813_v3 = vld [vmem:[#allocation5 + $0x684] ss:$8 sps:$4 sm:$0xff]   ;;  %v2808_v4 = vld [vmem:[#allocation5 + $0x280] ss:$8 sps:$4 sm:$0xff]  }
  0x9f   :  { %1937 = vmatprep.subr.bf16.mxu0 %v2729_v5  ;;  %v2811_v5 = vld [vmem:[#allocation5 + $0x680] ss:$8 sps:$4 sm:$0xff]  }
  0xa1   :  { %1774 = vmatpush1.bf16.msra.mxu1 %v2724_v6  ;;  %v2816_v6 = vld [vmem:[#allocation5 + $0x294] ss:$8 sps:$4 sm:$0xff]  }
  0xa2   :  { %1938 = vmatpush1.bf16.msra.mxu0 %v2727_v7  ;;  %1775 = vmatprep.subr.bf16.mxu1 %v2732_v8  ;;  %v2819_v7 = vld [vmem:[#allocation5 + $0x694] ss:$8 sps:$4 sm:$0xff]   ;;  %v2814_v8 = vld [vmem:[#allocation5 + $0x290] ss:$8 sps:$4 sm:$0xff]  }
  0xa3   :  { %1939 = vmatprep.subr.bf16.mxu0 %v2735_v9  ;;  %v2817_v9 = vld [vmem:[#allocation5 + $0x690] ss:$8 sps:$4 sm:$0xff]  }
  0xa5   :  { %1776 = vmatpush1.bf16.msra.mxu1 %v2730_v10  ;;  %v2822_v10 = vld [vmem:[#allocation5 + $0x2a4] ss:$8 sps:$4 sm:$0xff]  }
  0xa6   :  { %1940 = vmatpush1.bf16.msra.mxu0 %v2733_v11  ;;  %1777 = vmatprep.subr.bf16.mxu1 %v2738_v12  ;;  %v2825_v11 = vld [vmem:[#allocation5 + $0x6a4] ss:$8 sps:$4 sm:$0xff]   ;;  %v2820_v12 = vld [vmem:[#allocation5 + $0x2a0] ss:$8 sps:$4 sm:$0xff]  }
  0xa7   :  { %1941 = vmatprep.subr.bf16.mxu0 %v2741_v13  ;;  %v2823_v13 = vld [vmem:[#allocation5 + $0x6a0] ss:$8 sps:$4 sm:$0xff]  }
  0xa9   :  { %1778 = vmatpush1.bf16.msra.mxu1 %v2736_v14  ;;  %v2828_v14 = vld [vmem:[#allocation5 + $0x2b4] ss:$8 sps:$4 sm:$0xff]  }
  0xaa   :  { %1942 = vmatpush1.bf16.msra.mxu0 %v2739_v15  ;;  %1779 = vmatprep.subr.bf16.mxu1 %v2744_v16  ;;  %v2831_v15 = vld [vmem:[#allocation5 + $0x6b4] ss:$8 sps:$4 sm:$0xff]   ;;  %v2826_v16 = vld [vmem:[#allocation5 + $0x2b0] ss:$8 sps:$4 sm:$0xff]  }
  0xab   :  { %1943 = vmatprep.subr.bf16.mxu0 %v2747_v17  ;;  %v2829_v17 = vld [vmem:[#allocation5 + $0x6b0] ss:$8 sps:$4 sm:$0xff]  }
  0xad   :  { %1780 = vmatpush1.bf16.msra.mxu1 %v2742_v18  ;;  %v2834_v18 = vld [vmem:[#allocation5 + $0x2c4] ss:$8 sps:$4 sm:$0xff]  }
  0xae   :  { %1944 = vmatpush1.bf16.msra.mxu0 %v2745_v19  ;;  %1781 = vmatprep.subr.bf16.mxu1 %v2750_v22  ;;  %v2837_v19 = vld [vmem:[#allocation5 + $0x6c4] ss:$8 sps:$4 sm:$0xff]   ;;  %v2832_v22 = vld [vmem:[#allocation5 + $0x2c0] ss:$8 sps:$4 sm:$0xff]  }
  0xaf   :  { %1945 = vmatprep.subr.bf16.mxu0 %v2753_v23  ;;  %v2835_v23 = vld [vmem:[#allocation5 + $0x6c0] ss:$8 sps:$4 sm:$0xff]  }
  0xb1   :  { %1782 = vmatpush1.bf16.msra.mxu1 %v2748_v24  ;;  %v2840_v24 = vld [vmem:[#allocation5 + $0x2d4] ss:$8 sps:$4 sm:$0xff]  }
  0xb2   :  { %1946 = vmatpush1.bf16.msra.mxu0 %v2751_v25  ;;  %1783 = vmatprep.subr.bf16.mxu1 %v2756_v26  ;;  %v2843_v25 = vld [vmem:[#allocation5 + $0x6d4] ss:$8 sps:$4 sm:$0xff]   ;;  %v2838_v26 = vld [vmem:[#allocation5 + $0x2d0] ss:$8 sps:$4 sm:$0xff]  }
  0xb3   :  { %1947 = vmatprep.subr.bf16.mxu0 %v2759_v27  ;;  %v2841_v27 = vld [vmem:[#allocation5 + $0x6d0] ss:$8 sps:$4 sm:$0xff]  }
  0xb5   :  { %1784 = vmatpush1.bf16.msra.mxu1 %v2754_v31  ;;  %v2846_v31 = vld [vmem:[#allocation5 + $0x2e4] ss:$8 sps:$4 sm:$0xff]  }
  0xb6   :  { %1948 = vmatpush1.bf16.msra.mxu0 %v2757_v32  ;;  %1794 = vmatprep.subr.bf16.mxu1 %v2762_v34  ;;  %v2849_v32 = vld [vmem:[#allocation5 + $0x6e4] ss:$8 sps:$4 sm:$0xff]   ;;  %v2844_v34 = vld [vmem:[#allocation5 + $0x2e0] ss:$8 sps:$4 sm:$0xff]  }
  0xb7   :  { %1958 = vmatprep.subr.bf16.mxu0 %v2765_v35  ;;  %v2847_v35 = vld [vmem:[#allocation5 + $0x6e0] ss:$8 sps:$4 sm:$0xff]  }
  0xb8   :  { %1786 = vmatmul.mubr.bf16.vlgmr.msra.gmra.mrb[0].mxu1 %v363_v36  ;;  %v2852_v36 = vld [vmem:[#allocation5 + $0x2f4] ss:$8 sps:$4 sm:$0xff]  }
  0xb9   :  { %1950 = vmatmul.mubr.bf16.vlgmr.msra.gmra.mrb[0].mxu0 %v412_v37  ;;  %1795 = vmatpush1.bf16.msra.mxu1 %v2760_v38  ;;  %v2855_v37 = vld [vmem:[#allocation5 + $0x6f4] ss:$8 sps:$4 sm:$0xff]   ;;  %v2850_v38 = vld [vmem:[#allocation5 + $0x2f0] ss:$8 sps:$4 sm:$0xff]  }
  0xba   :  { %1959 = vmatpush1.bf16.msra.mxu0 %v2763_v39  ;;  %1796 = vmatprep.subr.bf16.mxu1 %v2768_v40  ;;  %v2853_v39 = vld [vmem:[#allocation5 + $0x6f0] ss:$8 sps:$4 sm:$0xff]   ;;  %v2858_v40 = vld [vmem:[#allocation5 + $0x304] ss:$8 sps:$4 sm:$0xff]  }
  0xbb   :  { %1960 = vmatprep.subr.bf16.mxu0 %v2771_v41  ;;  %1826 = vmatprep.mubr.bf16.mxu1 %v3150_v28  ;;  %v2861_v41 = vld [vmem:[#allocation5 + $0x704] ss:$8 sps:$4 sm:$0xff]  }
  0xbc   :  { %1990 = vmatprep.mubr.bf16.mxu0 %v3153_v29 }
  0xbd   :  { %1797 = vmatpush1.bf16.msra.mxu1 %v2766_v42  ;;  %v2856_v42 = vld [vmem:[#allocation5 + $0x300] ss:$8 sps:$4 sm:$0xff]  }
  0xbe   :  { %1961 = vmatpush1.bf16.msra.mxu0 %v2769_v43  ;;  %1798 = vmatprep.subr.bf16.mxu1 %v2774_v20  ;;  %v2859_v43 = vld [vmem:[#allocation5 + $0x700] ss:$8 sps:$4 sm:$0xff]   ;;  %v2864_v20 = vld [vmem:[#allocation5 + $0x314] ss:$8 sps:$4 sm:$0xff]  }
  0xbf   :  { %1962 = vmatprep.subr.bf16.mxu0 %v2777_v44  ;;  %v2867_v44 = vld [vmem:[#allocation5 + $0x714] ss:$8 sps:$4 sm:$0xff]  }
  0xc1   :  { %1799 = vmatpush1.bf16.msra.mxu1 %v2772_v21  ;;  %v366_v21 = vcombine.high %v3150_v28, %v3150_v28  ;;  %v2868_v28 = vld [vmem:[#allocation5 + $0x320] ss:$8 sps:$4 sm:$0xff]  }
  0xc2   :  { %1963 = vmatpush1.bf16.msra.mxu0 %v2775_v45  ;;  %1800 = vmatprep.subr.bf16.mxu1 %v2780_v46  ;;  %v415_v45 = vcombine.high %v3153_v29, %v3153_v29  ;;  %v2862_v46 = vld [vmem:[#allocation5 + $0x310] ss:$8 sps:$4 sm:$0xff]   ;;  %v2876_v29 = vld [vmem:[#allocation5 + $0x334] ss:$8 sps:$4 sm:$0xff]  }
  0xc3   :  { %1964 = vmatprep.subr.bf16.mxu0 %v2783_v47  ;;  %v2865_v47 = vld [vmem:[#allocation5 + $0x710] ss:$8 sps:$4 sm:$0xff]  }
  0xc5   :  { %1801 = vmatpush1.bf16.msra.mxu1 %v2778_v48  ;;  %v2870_v48 = vld [vmem:[#allocation5 + $0x324] ss:$8 sps:$4 sm:$0xff]  }
  0xc6   :  { %1965 = vmatpush1.bf16.msra.mxu0 %v2781_v49  ;;  %1802 = vmatprep.subr.bf16.mxu1 %v2786_v50  ;;  %v2873_v49 = vld [vmem:[#allocation5 + $0x724] ss:$8 sps:$4 sm:$0xff]   ;;  %v2871_v50 = vld [vmem:[#allocation5 + $0x720] ss:$8 sps:$4 sm:$0xff]  }
  0xc7   :  { %1966 = vmatprep.subr.bf16.mxu0 %v2789_v51  ;;  %v2879_v51 = vld [vmem:[#allocation5 + $0x734] ss:$8 sps:$4 sm:$0xff]  }
  0xc9   :  { %1803 = vmatpush1.bf16.msra.mxu1 %v2784_v52  ;;  %v2874_v52 = vld [vmem:[#allocation5 + $0x330] ss:$8 sps:$4 sm:$0xff]  }
  0xca   :  { %1967 = vmatpush1.bf16.msra.mxu0 %v2787_v53  ;;  %1804 = vmatprep.subr.bf16.mxu1 %v2792_v54  ;;  %v2877_v53 = vld [vmem:[#allocation5 + $0x730] ss:$8 sps:$4 sm:$0xff]   ;;  %v2882_v54 = vld [vmem:[#allocation5 + $0x344] ss:$8 sps:$4 sm:$0xff]  }
  0xcb   :  { %1968 = vmatprep.subr.bf16.mxu0 %v2795_v55  ;;  %v2885_v55 = vld [vmem:[#allocation5 + $0x744] ss:$8 sps:$4 sm:$0xff]  }
  0xcd   :  { %1805 = vmatpush1.bf16.msra.mxu1 %v2790_v56  ;;  %v2880_v56 = vld [vmem:[#allocation5 + $0x340] ss:$8 sps:$4 sm:$0xff]  }
  0xce   :  { %1969 = vmatpush1.bf16.msra.mxu0 %v2793_v57  ;;  %1806 = vmatprep.subr.bf16.mxu1 %v2798_v58  ;;  %v2883_v57 = vld [vmem:[#allocation5 + $0x740] ss:$8 sps:$4 sm:$0xff]   ;;  %v2888_v58 = vld [vmem:[#allocation5 + $0x354] ss:$8 sps:$4 sm:$0xff]  }
  0xcf   :  { %1970 = vmatprep.subr.bf16.mxu0 %v2801_v59  ;;  %v2891_v59 = vld [vmem:[#allocation5 + $0x754] ss:$8 sps:$4 sm:$0xff]  }
  0xd1   :  { %1807 = vmatpush1.bf16.msra.mxu1 %v2796_v60  ;;  %v2886_v60 = vld [vmem:[#allocation5 + $0x350] ss:$8 sps:$4 sm:$0xff]  }
  0xd2   :  { %1971 = vmatpush1.bf16.msra.mxu0 %v2799_v61  ;;  %1808 = vmatprep.subr.bf16.mxu1 %v2804_v62  ;;  %v2889_v61 = vld [vmem:[#allocation5 + $0x750] ss:$8 sps:$4 sm:$0xff]   ;;  %v2894_v62 = vld [vmem:[#allocation5 + $0x364] ss:$8 sps:$4 sm:$0xff]  }
  0xd3   :  { %1972 = vmatprep.subr.bf16.mxu0 %v2807_v63  ;;  %v2897_v63 = vld [vmem:[#allocation5 + $0x764] ss:$8 sps:$4 sm:$0xff]  }
  0xd5   :  { %1809 = vmatpush1.bf16.msra.mxu1 %v2802_v0  ;;  %v2892_v0 = vld [vmem:[#allocation5 + $0x360] ss:$8 sps:$4 sm:$0xff]  }
  0xd6   :  { %1973 = vmatpush1.bf16.msra.mxu0 %v2805_v1  ;;  %1810 = vmatprep.subr.bf16.mxu1 %v2810_v2  ;;  %v2895_v1 = vld [vmem:[#allocation5 + $0x760] ss:$8 sps:$4 sm:$0xff]   ;;  %v2900_v2 = vld [vmem:[#allocation5 + $0x374] ss:$8 sps:$4 sm:$0xff]  }
  0xd7   :  { %1974 = vmatprep.subr.bf16.mxu0 %v2813_v3  ;;  %v2903_v3 = vld [vmem:[#allocation5 + $0x774] ss:$8 sps:$4 sm:$0xff]  }
  0xd9   :  { %1811 = vmatpush1.bf16.msra.mxu1 %v2808_v4  ;;  %v2898_v4 = vld [vmem:[#allocation5 + $0x370] ss:$8 sps:$4 sm:$0xff]  }
  0xda   :  { %1975 = vmatpush1.bf16.msra.mxu0 %v2811_v5  ;;  %1812 = vmatprep.subr.bf16.mxu1 %v2816_v6  ;;  %v2901_v5 = vld [vmem:[#allocation5 + $0x770] ss:$8 sps:$4 sm:$0xff]   ;;  %v2906_v6 = vld [vmem:[#allocation5 + $0x384] ss:$8 sps:$4 sm:$0xff]  }
  0xdb   :  { %1976 = vmatprep.subr.bf16.mxu0 %v2819_v7  ;;  %v2909_v7 = vld [vmem:[#allocation5 + $0x784] ss:$8 sps:$4 sm:$0xff]  }
  0xdd   :  { %1813 = vmatpush1.bf16.msra.mxu1 %v2814_v8  ;;  %v2904_v8 = vld [vmem:[#allocation5 + $0x380] ss:$8 sps:$4 sm:$0xff]  }
  0xde   :  { %1977 = vmatpush1.bf16.msra.mxu0 %v2817_v9  ;;  %1814 = vmatprep.subr.bf16.mxu1 %v2822_v10  ;;  %v2907_v9 = vld [vmem:[#allocation5 + $0x780] ss:$8 sps:$4 sm:$0xff]   ;;  %v2912_v10 = vld [vmem:[#allocation5 + $0x394] ss:$8 sps:$4 sm:$0xff]  }
  0xdf   :  { %1978 = vmatprep.subr.bf16.mxu0 %v2825_v11  ;;  %v2915_v11 = vld [vmem:[#allocation5 + $0x794] ss:$8 sps:$4 sm:$0xff]  }
  0xe1   :  { %1815 = vmatpush1.bf16.msra.mxu1 %v2820_v12  ;;  %v2910_v12 = vld [vmem:[#allocation5 + $0x390] ss:$8 sps:$4 sm:$0xff]  }
  0xe2   :  { %1979 = vmatpush1.bf16.msra.mxu0 %v2823_v13  ;;  %1816 = vmatprep.subr.bf16.mxu1 %v2828_v14  ;;  %v2913_v13 = vld [vmem:[#allocation5 + $0x790] ss:$8 sps:$4 sm:$0xff]   ;;  %v2918_v14 = vld [vmem:[#allocation5 + $0x3a4] ss:$8 sps:$4 sm:$0xff]  }
  0xe3   :  { %1980 = vmatprep.subr.bf16.mxu0 %v2831_v15  ;;  %v2921_v15 = vld [vmem:[#allocation5 + $0x7a4] ss:$8 sps:$4 sm:$0xff]  }
  0xe5   :  { %1817 = vmatpush1.bf16.msra.mxu1 %v2826_v16  ;;  %v2916_v16 = vld [vmem:[#allocation5 + $0x3a0] ss:$8 sps:$4 sm:$0xff]  }
  0xe6   :  { %1981 = vmatpush1.bf16.msra.mxu0 %v2829_v17  ;;  %1818 = vmatprep.subr.bf16.mxu1 %v2834_v18  ;;  %v2919_v17 = vld [vmem:[#allocation5 + $0x7a0] ss:$8 sps:$4 sm:$0xff]   ;;  %v2924_v18 = vld [vmem:[#allocation5 + $0x3b4] ss:$8 sps:$4 sm:$0xff]  }
  0xe7   :  { %1982 = vmatprep.subr.bf16.mxu0 %v2837_v19  ;;  %v2927_v19 = vld [vmem:[#allocation5 + $0x7b4] ss:$8 sps:$4 sm:$0xff]  }
  0xe9   :  { %1819 = vmatpush1.bf16.msra.mxu1 %v2832_v22  ;;  %v2922_v22 = vld [vmem:[#allocation5 + $0x3b0] ss:$8 sps:$4 sm:$0xff]  }
  0xea   :  { %1983 = vmatpush1.bf16.msra.mxu0 %v2835_v23  ;;  %1820 = vmatprep.subr.bf16.mxu1 %v2840_v24  ;;  %v2925_v23 = vld [vmem:[#allocation5 + $0x7b0] ss:$8 sps:$4 sm:$0xff]   ;;  %v2930_v24 = vld [vmem:[#allocation5 + $0x3c4] ss:$8 sps:$4 sm:$0xff]  }
  0xeb   :  { %1984 = vmatprep.subr.bf16.mxu0 %v2843_v25  ;;  %v2933_v25 = vld [vmem:[#allocation5 + $0x7c4] ss:$8 sps:$4 sm:$0xff]  }
  0xed   :  { %1821 = vmatpush1.bf16.msra.mxu1 %v2838_v26  ;;  %v2928_v26 = vld [vmem:[#allocation5 + $0x3c0] ss:$8 sps:$4 sm:$0xff]  }
  0xee   :  { %1985 = vmatpush1.bf16.msra.mxu0 %v2841_v27  ;;  %1822 = vmatprep.subr.bf16.mxu1 %v2846_v31  ;;  %v2931_v27 = vld [vmem:[#allocation5 + $0x7c0] ss:$8 sps:$4 sm:$0xff]   ;;  %v2936_v31 = vld [vmem:[#allocation5 + $0x3d4] ss:$8 sps:$4 sm:$0xff]  }
  0xef   :  { %1986 = vmatprep.subr.bf16.mxu0 %v2849_v32  ;;  %v2939_v32 = vld [vmem:[#allocation5 + $0x7d4] ss:$8 sps:$4 sm:$0xff]  }
  0xf1   :  { %1823 = vmatpush1.bf16.msra.mxu1 %v2844_v34  ;;  %v2934_v34 = vld [vmem:[#allocation5 + $0x3d0] ss:$8 sps:$4 sm:$0xff]  }
  0xf2   :  { %1987 = vmatpush1.bf16.msra.mxu0 %v2847_v35  ;;  %1824 = vmatprep.subr.bf16.mxu1 %v2852_v36  ;;  %v2937_v35 = vld [vmem:[#allocation5 + $0x7d0] ss:$8 sps:$4 sm:$0xff]   ;;  %v2942_v36 = vld [vmem:[#allocation5 + $0x3e4] ss:$8 sps:$4 sm:$0xff]  }
  0xf3   :  { %1988 = vmatprep.subr.bf16.mxu0 %v2855_v37  ;;  %v2945_v37 = vld [vmem:[#allocation5 + $0x7e4] ss:$8 sps:$4 sm:$0xff]  }
  0xf5   :  { %1825 = vmatpush1.bf16.msra.mxu1 %v2850_v38  ;;  %v2940_v38 = vld [vmem:[#allocation5 + $0x3e0] ss:$8 sps:$4 sm:$0xff]  }
  0xf6   :  { %1989 = vmatpush1.bf16.msra.mxu0 %v2853_v39  ;;  %1835 = vmatprep.subr.bf16.mxu1 %v2858_v40  ;;  %v2943_v39 = vld [vmem:[#allocation5 + $0x7e0] ss:$8 sps:$4 sm:$0xff]   ;;  %v2948_v40 = vld [vmem:[#allocation5 + $0x3f4] ss:$8 sps:$4 sm:$0xff]  }
  0xf7   :  { %1999 = vmatprep.subr.bf16.mxu0 %v2861_v41  ;;  %v2951_v41 = vld [vmem:[#allocation5 + $0x7f4] ss:$8 sps:$4 sm:$0xff]  }
  0xf8   :  { %1827 = vmatmul.mubr.bf16.vlgmr.msra.gmra.mrb[0].mxu1 %v3156_v30 }
  0xf9   :  { %1991 = vmatmul.mubr.bf16.vlgmr.msra.gmra.mrb[0].mxu0 %v3161_v33  ;;  %1836 = vmatpush1.bf16.msra.mxu1 %v2856_v42  ;;  %v2946_v42 = vld [vmem:[#allocation5 + $0x3f0] ss:$8 sps:$4 sm:$0xff]  }
  0xfa   :  { %2000 = vmatpush1.bf16.msra.mxu0 %v2859_v43  ;;  %1837 = vmatprep.subr.bf16.mxu1 %v2864_v20  ;;  %v2949_v43 = vld [vmem:[#allocation5 + $0x7f0] ss:$8 sps:$4 sm:$0xff]   ;;  %v2952_v20 = vld [vmem:[#allocation7 + $0x40] sm:$0xff]  }
  0xfb   :  { %2001 = vmatprep.subr.bf16.mxu0 %v2867_v44  ;;  %1867 = vmatprep.mubr.bf16.mxu1 %v366_v21  ;;  %v364_v44 = vcombine.high %v3156_v30, %v3156_v30  ;;  %v413_v21 = vcombine.high %v3161_v33, %v3161_v33  ;;  %v2959_v30 = vld [vmem:[#allocation7 + $0x18] sm:$0xff]   ;;  %v2961_v33 = vld [vmem:[#allocation7 + $0x20] sm:$0xff]  }
  0xfc   :  { %2031 = vmatprep.mubr.bf16.mxu0 %v415_v45  ;;  %v2953_v45 = vld [vmem:[#allocation7] sm:$0xff]  }
  0xfd   :  { %1838 = vmatpush1.bf16.msra.mxu1 %v2862_v46  ;;  %v2954_v46 = vld [vmem:[#allocation7 + $0x48] sm:$0xff]  }
  0xfe   :  { %2002 = vmatpush1.bf16.msra.mxu0 %v2865_v47  ;;  %1839 = vmatprep.subr.bf16.mxu1 %v2870_v48  ;;  %v2955_v47 = vld [vmem:[#allocation7 + $0x8] sm:$0xff]   ;;  %v2956_v48 = vld [vmem:[#allocation7 + $0x50] sm:$0xff]  }
  0xff   :  { %2003 = vmatprep.subr.bf16.mxu0 %v2873_v49  ;;  %v2957_v49 = vld [vmem:[#allocation7 + $0x10] sm:$0xff]  }
 0x101   :  { %1840 = vmatpush1.bf16.msra.mxu1 %v2868_v28  ;;  %v2958_v28 = vld [vmem:[#allocation7 + $0x58] sm:$0xff]  }
 0x102   :  { %2004 = vmatpush1.bf16.msra.mxu0 %v2871_v50  ;;  %1841 = vmatprep.subr.bf16.mxu1 %v2876_v29  ;;  %v2960_v50 = vld [vmem:[#allocation7 + $0x60] sm:$0xff]   ;;  %v2962_v29 = vld [vmem:[#allocation7 + $0x68] sm:$0xff]  }
 0x103   :  { %2005 = vmatprep.subr.bf16.mxu0 %v2879_v51  ;;  %v2963_v51 = vld [vmem:[#allocation7 + $0x28] sm:$0xff]  }
 0x105   :  { %1842 = vmatpush1.bf16.msra.mxu1 %v2874_v52  ;;  %v2964_v52 = vld [vmem:[#allocation7 + $0x70] sm:$0xff]  }
 0x106   :  { %2006 = vmatpush1.bf16.msra.mxu0 %v2877_v53  ;;  %1843 = vmatprep.subr.bf16.mxu1 %v2882_v54  ;;  %v2965_v53 = vld [vmem:[#allocation7 + $0x30] sm:$0xff]   ;;  %v2966_v54 = vld [vmem:[#allocation7 + $0x78] sm:$0xff]  }
 0x107   :  { %2007 = vmatprep.subr.bf16.mxu0 %v2885_v55  ;;  %v2967_v55 = vld [vmem:[#allocation7 + $0x38] sm:$0xff]  }
 0x109   :  { %1844 = vmatpush1.bf16.msra.mxu1 %v2880_v56 }
 0x10a   :  { %2008 = vmatpush1.bf16.msra.mxu0 %v2883_v57  ;;  %1845 = vmatprep.subr.bf16.mxu1 %v2888_v58 }
 0x10b   :  { %2009 = vmatprep.subr.bf16.mxu0 %v2891_v59 }
 0x10d   :  { %1846 = vmatpush1.bf16.msra.mxu1 %v2886_v60 }
 0x10e   :  { %2010 = vmatpush1.bf16.msra.mxu0 %v2889_v61  ;;  %1847 = vmatprep.subr.bf16.mxu1 %v2894_v62 }
 0x10f   :  { %2011 = vmatprep.subr.bf16.mxu0 %v2897_v63 }
 0x111   :  { %1848 = vmatpush1.bf16.msra.mxu1 %v2892_v0 }
 0x112   :  { %2012 = vmatpush1.bf16.msra.mxu0 %v2895_v1  ;;  %1849 = vmatprep.subr.bf16.mxu1 %v2900_v2 }
 0x113   :  { %2013 = vmatprep.subr.bf16.mxu0 %v2903_v3 }
 0x115   :  { %1850 = vmatpush1.bf16.msra.mxu1 %v2898_v4 }
 0x116   :  { %2014 = vmatpush1.bf16.msra.mxu0 %v2901_v5  ;;  %1851 = vmatprep.subr.bf16.mxu1 %v2906_v6 }
 0x117   :  { %2015 = vmatprep.subr.bf16.mxu0 %v2909_v7  ;;  %v2492_v7 = vld [vmem:[%s3199_s3] ss:$0 sm:$0xff] }
 0x119   :  { %1852 = vmatpush1.bf16.msra.mxu1 %v2904_v8 }
 0x11a   :  { %2016 = vmatpush1.bf16.msra.mxu0 %v2907_v9  ;;  %1853 = vmatprep.subr.bf16.mxu1 %v2912_v10 }
 0x11b   :  { %2017 = vmatprep.subr.bf16.mxu0 %v2915_v11 }
 0x11d   :  { %1854 = vmatpush1.bf16.msra.mxu1 %v2910_v12 }
 0x11e   :  { %2018 = vmatpush1.bf16.msra.mxu0 %v2913_v13  ;;  %1855 = vmatprep.subr.bf16.mxu1 %v2918_v14 }
 0x11f   :  { %2019 = vmatprep.subr.bf16.mxu0 %v2921_v15 }
 0x121   :  { %1856 = vmatpush1.bf16.msra.mxu1 %v2916_v16 }
 0x122   :  { %2020 = vmatpush1.bf16.msra.mxu0 %v2919_v17  ;;  %1857 = vmatprep.subr.bf16.mxu1 %v2924_v18 }
 0x123   :  { %2021 = vmatprep.subr.bf16.mxu0 %v2927_v19 }
 0x125   :  { %1858 = vmatpush1.bf16.msra.mxu1 %v2922_v22 }
 0x126   :  { %2022 = vmatpush1.bf16.msra.mxu0 %v2925_v23  ;;  %1859 = vmatprep.subr.bf16.mxu1 %v2930_v24 }
 0x127   :  { %2023 = vmatprep.subr.bf16.mxu0 %v2933_v25 }
 0x129   :  { %1860 = vmatpush1.bf16.msra.mxu1 %v2928_v26 }
 0x12a   :  { %2024 = vmatpush1.bf16.msra.mxu0 %v2931_v27  ;;  %1861 = vmatprep.subr.bf16.mxu1 %v2936_v31 }
 0x12b   :  { %2025 = vmatprep.subr.bf16.mxu0 %v2939_v32 }
 0x12d   :  { %1862 = vmatpush1.bf16.msra.mxu1 %v2934_v34 }
 0x12e   :  { %2026 = vmatpush1.bf16.msra.mxu0 %v2937_v35  ;;  %1863 = vmatprep.subr.bf16.mxu1 %v2942_v36 }
 0x12f   :  { %2027 = vmatprep.subr.bf16.mxu0 %v2945_v37 }
 0x131   :  { %1864 = vmatpush1.bf16.msra.mxu1 %v2940_v38 }
 0x132   :  { %2028 = vmatpush1.bf16.msra.mxu0 %v2943_v39  ;;  %1865 = vmatprep.subr.bf16.mxu1 %v2948_v40 }
 0x133   :  { %2029 = vmatprep.subr.bf16.mxu0 %v2951_v41 }
 0x135   :  { %1866 = vmatpush1.bf16.msra.mxu1 %v2946_v42 }
 0x136   :  { %2030 = vmatpush1.bf16.msra.mxu0 %v2949_v43  ;;  %2509 = vmatprep.subr.bf16.mxu1 %v2952_v20 }
 0x138   :  { %1868 = vmatmul.mubr.bf16.vlgmr.msra.gmra.mrb[0].mxu1 %v364_v44 }
 0x139   :  { %2032 = vmatmul.mubr.bf16.vlgmr.msra.gmra.mrb[0].mxu0 %v413_v21  ;;  %2510 = vmatpush3.bf16.msra.mxu1 %v2953_v45 }
 0x13a   :  { %2511 = vmatprep.subr.bf16.mxu1 %v2954_v46 }
 0x13d   :  { %2512 = vmatpush3.bf16.msra.mxu1 %v2955_v47 }
 0x13e   :  { %2513 = vmatprep.subr.bf16.mxu1 %v2956_v48 }
 0x141   :  { %2514 = vmatpush3.bf16.msra.mxu1 %v2957_v49 }
 0x142   :  { %2515 = vmatprep.subr.bf16.mxu1 %v2958_v28 }
 0x145   :  { %2516 = vmatpush3.bf16.msra.mxu1 %v2959_v30 }
 0x146   :  { %2517 = vmatprep.subr.bf16.mxu1 %v2960_v50 }
 0x149   :  { %2518 = vmatpush3.bf16.msra.mxu1 %v2961_v33 }
 0x14a   :  { %2519 = vmatprep.subr.bf16.mxu1 %v2962_v29 }
 0x14d   :  { %2520 = vmatpush3.bf16.msra.mxu1 %v2963_v51 }
 0x14e   :  { %2521 = vmatprep.subr.bf16.mxu1 %v2964_v52 }
 0x151   :  { %2522 = vmatpush3.bf16.msra.mxu1 %v2965_v53 }
 0x152   :  { %2523 = vmatprep.subr.bf16.mxu1 %v2966_v54 }
 0x155   :  { %2524 = vmatpush3.bf16.msra.mxu1 %v2967_v55 }
 0x20b   :  { %v1869_v56 = vpop.f32.mrb[0].mxu1 }
 0x20c   :  { %v2033_v57 = vpop.f32.mrb[0].mxu0  ;;  %v1871_v59 = vpop.f32.mrb[1].mxu1 }
 0x20d   :  { %v2531_v58 = vadd.f32 %v2033_v57, %v1869_v56  ;;  %v2035_v60 = vpop.f32.mrb[1].mxu0  ;;  %v1873_v62 = vpop.f32.mrb[2].mxu1 }
 0x20e   :  { %v2532_v61 = vadd.f32 %v2035_v60, %v1871_v59  ;;  %v2037_v63 = vpop.f32.mrb[2].mxu0  ;;  %v1874_v1 = vpop.f32.mrb[3].mxu1 }
 0x20f   :  { %v2040_v0 = vmax.f32 %v2531_v58, 0.0  ;;  %v2038_v2 = vpop.f32.mrb[3].mxu0 }
 0x210   :  { %v2041_v3 = vmax.f32 %v2532_v61, 0.0 }
 0x211   :  { %v2042_v5 = vpack.c.bf16 %v2040_v0, %v2040_v0 }
 0x212   :  { %v2043_v4 = vpack.c.bf16 %v2041_v3, %v2041_v3 }
 0x214   :  { %2211 = vmatprep.mubr.bf16.mxu1 %v2043_v4 }
 0x215   :  { %2212 = vmatmul.mubr.bf16.vlgmr.msra.gmra.mrb[4].mxu1 %v2042_v5 }
 0x2e8   :  { %v2525_v6 = vpop.f32.mrb[4].mxu1 }
 0x2e9   :  { %v2526_v8 = vpop.f32.mrb[5].mxu1 }
 0x2ea   :  { %v2527_v9 = vadd.f32 %v2526_v8, %v2525_v6  ;;  %v2528_v10 = vpop.f32.mrb[6].mxu1 }
 0x2eb   :  { %v2529_v11 = vpop.f32.mrb[7].mxu1 }
 0x2ec   :  { %v2214_v12 = vadd.f32 %v2527_v9, %v2492_v7 }
 0x2ee   :  { %2219 = vst [vmem:[#allocation8] sm:$0x3] %v2214_v12 }
 0x2ef   :  { %3045 = shalt.err (!%p3042_p0)
}
 0x2f0   :  { %s3046_s3 = scalar_lea.hbm %s3200_s4, 32 }
 0x2f1   :  { %p3047_p1 = scmp.ne.s32.totalorder %s3200_s4, %s3046_s3  ;;  %p3050_p2 = scmp.lt.u32.totalorder %s3046_s3, %s3200_s4 }
 0x2f3   :  { %p3052_p3 = pnand %p3050_p2, %p3047_p1 }
 0x2f5   :  { %3055 = shalt.err (!%p3052_p3)
}
 0x2f6   :  { %2229 = dma.vmem_to_hbm [thread:$0]  %s2227_s29, 32, %s3200_s4, [#allocation4]  }
 0x2f7   :  { %3060 = dma.done.wait [#allocation4], 32  }
 0x2f8   :  { %3061 = vsyncadd [#allocation4], 4294967264 }
 0x2f9   :  { %2233 = vsyncpa [#allocation3], 1 }
 0x2fa   :  { %2234 = vsyncpa [#allocation6], 1 }
 0x2fb   :  { %2235 = vsyncpa [#allocation4], 1 }

</bundles_post_ra>
